<compile_context>
chip_gen: v7x
topology: tpu7x:2x2x1
jax: 0.10.0
libtpu: 0.0.40
codegen_flags: <defaults>
</compile_context>

<pallas_src>
import functools

import jax
import jax.numpy as jnp
from jax.experimental import pallas as pl
from jax.experimental.pallas import tpu as pltpu  # noqa: F401  (TPU backend)


def rnn_kernel(x_ref, wih_ref, bc_ref, whh_ref, wo_ref, bo_ref, out_ref):
    S, B, I = x_ref.shape

    # --- Hoisted input projection (one well-shaped matmul, off the serial path)
    # xw[t] = x_t @ W_ih + (b_i + b_h)
    x2 = x_ref[...].reshape(S * B, I)
    xw = (jnp.dot(x2, wih_ref[...], preferred_element_type=jnp.float32)
          + bc_ref[...]).reshape(S, B, -1)

    whh = whh_ref[...]

    # --- Serial recurrence. h0 == 0, so step 0 needs no h @ W_hh matmul.
    h = jnp.tanh(xw[0])
    # S is static and tiny -> this Python loop fully unrolls at trace time
    # (equivalent to lax.fori_loop(..., unroll=True)); xw[t] are static slices.
    for t in range(1, S):
        h = jnp.tanh(xw[t] + jnp.dot(h, whh, preferred_element_type=jnp.float32))

    # --- Fused final Linear: out = h @ W_out + b_out
    out_ref[...] = (jnp.dot(h, wo_ref[...], preferred_element_type=jnp.float32)
                    + bo_ref[...]).astype(out_ref.dtype)


@functools.partial(jax.jit, static_argnames=())
def simple_rnn_forward(data, W_ih, b_i, W_hh, b_h, W_out, b_out):
    """data: (S, B, I) float32. Returns (B, O) float32."""
    S, B, I = data.shape
    H = W_ih.shape[1]
    O = W_out.shape[1]

    # Pre-sum the two RNN biases; reshape biases to 2-D rows for clean VMEM
    # layout / broadcasting inside the kernel.
    b_comb = (b_i + b_h).reshape(1, H)
    b_o2 = b_out.reshape(1, O)

    # No grid: single kernel invocation, every operand resident whole in VMEM
    # (default full-array blocks).
    return pl.pallas_call(
        rnn_kernel,
        out_shape=jax.ShapeDtypeStruct((B, O), jnp.float32),
    )(data, W_ih, b_comb, W_hh, W_out, b_o2)


def reference_forward(data, W_ih, b_i, W_hh, b_h, W_out, b_out):
    S, B, _ = data.shape
    H = W_ih.shape[1]
    h = jnp.zeros((B, H), jnp.float32)
    for step in range(S):
        x_t = data[step]
        h = jnp.tanh(x_t @ W_ih + b_i + h @ W_hh + b_h)
    return h @ W_out + b_out


if __name__ == "__main__":
    # Small shapes consistent with the module's forward.
    SEQ, BATCH, INPUT, HIDDEN, OUTPUT = 8, 8, 16, 32, 8

    key = jax.random.PRNGKey(0)
    ks = jax.random.split(key, 8)

    data = jax.random.normal(ks[0], (SEQ, BATCH, INPUT), jnp.float32)
    # RNN parameters (torch.randn init -> standard normal, deterministic here)
    W_ih = jax.random.normal(ks[1], (INPUT, HIDDEN), jnp.float32)
    W_hh = jax.random.normal(ks[2], (HIDDEN, HIDDEN), jnp.float32)
    b_i = jax.random.normal(ks[3], (HIDDEN,), jnp.float32)
    b_h = jax.random.normal(ks[4], (HIDDEN,), jnp.float32)
    # nn.Linear(hidden, output): uniform(-1/sqrt(H), 1/sqrt(H)); stored here
    # already transposed to (H, O) so the kernel does h @ W_out + b_out.
    bound = 1.0 / (HIDDEN ** 0.5)
    W_out = jax.random.uniform(ks[5], (HIDDEN, OUTPUT), jnp.float32, -bound, bound)
    b_out = jax.random.uniform(ks[6], (OUTPUT,), jnp.float32, -bound, bound)

    # TODO(synk): the backward hook (prnt / layer_norm of grad_input) is a
    # gradient-time transform with no forward-pass effect, so it is not
    # represented in this forward kernel.

    out = simple_rnn_forward(data, W_ih, b_i, W_hh, b_h, W_out, b_out)
    out = jax.block_until_ready(out)

    ref = reference_forward(data, W_ih, b_i, W_hh, b_h, W_out, b_out)
    assert out.shape == (BATCH, OUTPUT)
    assert jnp.allclose(out, ref, atol=1e-4, rtol=1e-4), "mismatch vs reference"

    print("KERNEL_OK")
</pallas_src>

<mosaic_0001>
module attributes {stable_mosaic.version = 11 : i64} {
  func.func @rnn_kernel(%arg0: memref<8x8x16xf32, #tpu.memory_space<vmem>>, %arg1: memref<16x32xf32, #tpu.memory_space<vmem>>, %arg2: memref<1x32xf32, #tpu.memory_space<vmem>>, %arg3: memref<32x32xf32, #tpu.memory_space<vmem>>, %arg4: memref<32x8xf32, #tpu.memory_space<vmem>>, %arg5: memref<1x8xf32, #tpu.memory_space<vmem>>, %arg6: memref<8x8xf32, #tpu.memory_space<vmem>>) attributes {dimension_semantics = [], scalar_prefetch = 0 : i64, scratch_operands = 0 : i64, tpu.core_type = #tpu.core_type<tc>} {
    %c0 = arith.constant 0 : index
    %c0_0 = arith.constant 0 : index
    %c0_1 = arith.constant 0 : index
    %0 = vector.load %arg0[%c0, %c0_0, %c0_1] : memref<8x8x16xf32, #tpu.memory_space<vmem>>, vector<8x8x16xf32>
    %1 = vector.shape_cast %0 : vector<8x8x16xf32> to vector<64x16xf32>
    %c0_2 = arith.constant 0 : index
    %c0_3 = arith.constant 0 : index
    %2 = vector.load %arg1[%c0_2, %c0_3] : memref<16x32xf32, #tpu.memory_space<vmem>>, vector<16x32xf32>
    %cst = arith.constant dense<0.000000e+00> : vector<64x32xf32>
    %3 = tpu.matmul %1, %2, %cst {dimension_numbers = #tpu.dot_dimension_numbers<[1], [0], [0], [1], [0, 0, 1, 1], [], []>} : vector<64x16xf32>, vector<16x32xf32>, vector<64x32xf32> -> vector<64x32xf32>
    %c0_4 = arith.constant 0 : index
    %c0_5 = arith.constant 0 : index
    %4 = vector.load %arg2[%c0_4, %c0_5] : memref<1x32xf32, #tpu.memory_space<vmem>>, vector<1x32xf32>
    %5 = vector.broadcast %4 : vector<1x32xf32> to vector<64x32xf32>
    %6 = arith.addf %3, %5 : vector<64x32xf32>
    %7 = vector.shape_cast %6 : vector<64x32xf32> to vector<8x8x32xf32>
    %c0_6 = arith.constant 0 : index
    %c0_7 = arith.constant 0 : index
    %8 = vector.load %arg3[%c0_6, %c0_7] : memref<32x32xf32, #tpu.memory_space<vmem>>, vector<32x32xf32>
    %9 = vector.extract_strided_slice %7 {offsets = [0, 0, 0], sizes = [1, 8, 32], strides = [1, 1, 1]} : vector<8x8x32xf32> to vector<1x8x32xf32>
    %10 = vector.shape_cast %9 : vector<1x8x32xf32> to vector<8x32xf32>
    %11 = math.tanh %10 : vector<8x32xf32>
    %12 = vector.extract_strided_slice %7 {offsets = [1, 0, 0], sizes = [1, 8, 32], strides = [1, 1, 1]} : vector<8x8x32xf32> to vector<1x8x32xf32>
    %13 = vector.shape_cast %12 : vector<1x8x32xf32> to vector<8x32xf32>
    %cst_8 = arith.constant dense<0.000000e+00> : vector<8x32xf32>
    %14 = tpu.matmul %11, %8, %cst_8 {dimension_numbers = #tpu.dot_dimension_numbers<[1], [0], [0], [1], [0, 0, 1, 1], [], []>} : vector<8x32xf32>, vector<32x32xf32>, vector<8x32xf32> -> vector<8x32xf32>
    %15 = arith.addf %13, %14 : vector<8x32xf32>
    %16 = math.tanh %15 : vector<8x32xf32>
    %17 = vector.extract_strided_slice %7 {offsets = [2, 0, 0], sizes = [1, 8, 32], strides = [1, 1, 1]} : vector<8x8x32xf32> to vector<1x8x32xf32>
    %18 = vector.shape_cast %17 : vector<1x8x32xf32> to vector<8x32xf32>
    %cst_9 = arith.constant dense<0.000000e+00> : vector<8x32xf32>
    %19 = tpu.matmul %16, %8, %cst_9 {dimension_numbers = #tpu.dot_dimension_numbers<[1], [0], [0], [1], [0, 0, 1, 1], [], []>} : vector<8x32xf32>, vector<32x32xf32>, vector<8x32xf32> -> vector<8x32xf32>
    %20 = arith.addf %18, %19 : vector<8x32xf32>
    %21 = math.tanh %20 : vector<8x32xf32>
    %22 = vector.extract_strided_slice %7 {offsets = [3, 0, 0], sizes = [1, 8, 32], strides = [1, 1, 1]} : vector<8x8x32xf32> to vector<1x8x32xf32>
    %23 = vector.shape_cast %22 : vector<1x8x32xf32> to vector<8x32xf32>
    %cst_10 = arith.constant dense<0.000000e+00> : vector<8x32xf32>
    %24 = tpu.matmul %21, %8, %cst_10 {dimension_numbers = #tpu.dot_dimension_numbers<[1], [0], [0], [1], [0, 0, 1, 1], [], []>} : vector<8x32xf32>, vector<32x32xf32>, vector<8x32xf32> -> vector<8x32xf32>
    %25 = arith.addf %23, %24 : vector<8x32xf32>
    %26 = math.tanh %25 : vector<8x32xf32>
    %27 = vector.extract_strided_slice %7 {offsets = [4, 0, 0], sizes = [1, 8, 32], strides = [1, 1, 1]} : vector<8x8x32xf32> to vector<1x8x32xf32>
    %28 = vector.shape_cast %27 : vector<1x8x32xf32> to vector<8x32xf32>
    %cst_11 = arith.constant dense<0.000000e+00> : vector<8x32xf32>
    %29 = tpu.matmul %26, %8, %cst_11 {dimension_numbers = #tpu.dot_dimension_numbers<[1], [0], [0], [1], [0, 0, 1, 1], [], []>} : vector<8x32xf32>, vector<32x32xf32>, vector<8x32xf32> -> vector<8x32xf32>
    %30 = arith.addf %28, %29 : vector<8x32xf32>
    %31 = math.tanh %30 : vector<8x32xf32>
    %32 = vector.extract_strided_slice %7 {offsets = [5, 0, 0], sizes = [1, 8, 32], strides = [1, 1, 1]} : vector<8x8x32xf32> to vector<1x8x32xf32>
    %33 = vector.shape_cast %32 : vector<1x8x32xf32> to vector<8x32xf32>
    %cst_12 = arith.constant dense<0.000000e+00> : vector<8x32xf32>
    %34 = tpu.matmul %31, %8, %cst_12 {dimension_numbers = #tpu.dot_dimension_numbers<[1], [0], [0], [1], [0, 0, 1, 1], [], []>} : vector<8x32xf32>, vector<32x32xf32>, vector<8x32xf32> -> vector<8x32xf32>
    %35 = arith.addf %33, %34 : vector<8x32xf32>
    %36 = math.tanh %35 : vector<8x32xf32>
    %37 = vector.extract_strided_slice %7 {offsets = [6, 0, 0], sizes = [1, 8, 32], strides = [1, 1, 1]} : vector<8x8x32xf32> to vector<1x8x32xf32>
    %38 = vector.shape_cast %37 : vector<1x8x32xf32> to vector<8x32xf32>
    %cst_13 = arith.constant dense<0.000000e+00> : vector<8x32xf32>
    %39 = tpu.matmul %36, %8, %cst_13 {dimension_numbers = #tpu.dot_dimension_numbers<[1], [0], [0], [1], [0, 0, 1, 1], [], []>} : vector<8x32xf32>, vector<32x32xf32>, vector<8x32xf32> -> vector<8x32xf32>
    %40 = arith.addf %38, %39 : vector<8x32xf32>
    %41 = math.tanh %40 : vector<8x32xf32>
    %42 = vector.extract_strided_slice %7 {offsets = [7, 0, 0], sizes = [1, 8, 32], strides = [1, 1, 1]} : vector<8x8x32xf32> to vector<1x8x32xf32>
    %43 = vector.shape_cast %42 : vector<1x8x32xf32> to vector<8x32xf32>
    %cst_14 = arith.constant dense<0.000000e+00> : vector<8x32xf32>
    %44 = tpu.matmul %41, %8, %cst_14 {dimension_numbers = #tpu.dot_dimension_numbers<[1], [0], [0], [1], [0, 0, 1, 1], [], []>} : vector<8x32xf32>, vector<32x32xf32>, vector<8x32xf32> -> vector<8x32xf32>
    %45 = arith.addf %43, %44 : vector<8x32xf32>
    %46 = math.tanh %45 : vector<8x32xf32>
    %c0_15 = arith.constant 0 : index
    %c0_16 = arith.constant 0 : index
    %47 = vector.load %arg4[%c0_15, %c0_16] : memref<32x8xf32, #tpu.memory_space<vmem>>, vector<32x8xf32>
    %cst_17 = arith.constant dense<0.000000e+00> : vector<8x8xf32>
    %48 = tpu.matmul %46, %47, %cst_17 {dimension_numbers = #tpu.dot_dimension_numbers<[1], [0], [0], [1], [0, 0, 1, 1], [], []>} : vector<8x32xf32>, vector<32x8xf32>, vector<8x8xf32> -> vector<8x8xf32>
    %c0_18 = arith.constant 0 : index
    %c0_19 = arith.constant 0 : index
    %49 = vector.load %arg5[%c0_18, %c0_19] : memref<1x8xf32, #tpu.memory_space<vmem>>, vector<1x8xf32>
    %50 = vector.broadcast %49 : vector<1x8xf32> to vector<8x8xf32>
    %51 = arith.addf %48, %50 : vector<8x8xf32>
    %c0_20 = arith.constant 0 : index
    %c0_21 = arith.constant 0 : index
    %52 = vector.load %arg6[%c0_20, %c0_21] : memref<8x8xf32, #tpu.memory_space<vmem>>, vector<8x8xf32>
    tpu.vector_store %arg6[%c0_20, %c0_21], %51 {strides = array<i32>} : memref<8x8xf32, #tpu.memory_space<vmem>>, vector<8x8xf32>,
    return
  }
}

</mosaic_0001>

<bundles_post_ra>
// kernel: simple_rnn_forward.1
= control target key start
LH: loop header
LB: loop body
LE: loop exit
PB: predicated region body
PF: predicated region fallthrough
CT: control target
= control target key end

     0   :  { %11 = vsyncpa [#allocation3], 0  ;;  %s1290_s0 = inlined_call_operand.hbm [shape: f32[8,8,16], index: 0, kind: input, shape index: {}]   ;;  %s1291_s1 = inlined_call_operand.vmem [shape: f32[16,32], index: 1, kind: input, shape index: {}]   ;;  %s1292_s2 = inlined_call_operand.vmem [shape: f32[1,32], index: 2, kind: input, shape index: {}]   ;;  %s1293_s3 = inlined_call_operand.vmem [shape: f32[32,32], index: 3, kind: input, shape index: {}]   ;;  %s1294_s4 = inlined_call_operand.vmem [shape: f32[32,8], index: 4, kind: input, shape index: {}]   ;;  %s1295_s5 = inlined_call_operand.vmem [shape: f32[1,8], index: 5, kind: input, shape index: {}]   ;;  %s1296_s6 = inlined_call_operand.hbm [shape: f32[8,8], index: 6, kind: output, shape index: {}]  }
   0x1   :  { %12 = vsyncpa [#allocation4], 0  ;;  %s1112_s21 = smov [#allocation2]   ;;  %s1064_s25 = scalar_lea.hbm %s1290_s0, 1024 }
   0x2   :  { %s18_s22 = sshll.u32 %s1112_s21, 4  ;;  %p1065_p0 = scmp.ne.s32.totalorder %s1290_s0, %s1064_s25  ;;  %s19_s22 = int_to_ptr.vmem [resolvable:$true] %s18_s22 }
   0x3   :  { %p1068_p1 = scmp.lt.u32.totalorder %s1064_s25, %s1290_s0 }
   0x5   :  { %p1070_p2 = pnand %p1068_p1, %p1065_p0 }
   0x7   :  { %1073 = shalt.err (!%p1070_p2)
}
   0x8   :  { %s1074_s30 = scalar_lea.vmem %s19_s22, 1024  ;;  %p1079_p4 = scmp.lt.s32.totalorder %s19_s22, %s19_s22 }
   0x9   :  { %p1075_p3 = scmp.ne.s32.totalorder %s19_s22, %s1074_s30  ;;  %p1080_p5 = scmp.lt.s32.totalorder %s1074_s30, %s1074_s30 }
   0xb   :  { %p1081_p6 = por %p1080_p5, %p1079_p4 }
   0xd   :  { %p1082_p7 = pnand %p1081_p6, %p1075_p3 }
   0xf   :  { %1085 = shalt.err (!%p1082_p7)
}
  0x10   :  { %s1113_s7 = smov 128   ;;  %s1114_s8 = smov 8  }
  0x11   :  { %24 = dma.hbm_to_vmem [thread:$0]  %s1290_s0, 1024, %s19_s22, [#allocation3], %s1113_s7, %s1113_s7, %s1114_s8  }
  0x12   :  { %1108 = dma.done.wait [#allocation3], 1024  }
  0x13   :  { %1109 = vsyncadd [#allocation3], 4294966272  ;;  %vm55_vm0 = vcmask 130048   ;;  %v46_v0 = vld [vmem:[%s1291_s1] sm:$0xff]  ;;  %v47_v1 = vld [vmem:[%s1291_s1 + $0x8] sm:$0xff]  ;;  %v1115_v8 = vmov 0.0|0.0  }
  0x14   :  { %v38_v2 = vld [vmem:[#allocation2] sm:$0xff]  ;;  %v989_v3 = vpack.c.bf16 %v47_v1, %v46_v0  ;;  %v39_v4 = vld [vmem:[#allocation2 + $0x8] sm:$0xff]  ;;  %v187_v7 = vld [vmem:[%s1293_s3 + $0x10] sm:$0xff]  ;;  %993 = vmatprep.subr.bf16.mxu1 %v1115_v8  ;;  %vm1116_vm1 = vmmov 0   ;;  %v1117_v11 = vmov 0.0   ;;  %vm190_vm2 = vcmask 261120  }
  0x15   :  { %889 = vmatprep.mubr.msk.f32.mxu0 %vm55_vm0, %v38_v2  ;;  %v185_v5 = vld [vmem:[%s1293_s3] sm:$0xff]  ;;  %v186_v6 = vld [vmem:[%s1293_s3 + $0x8] sm:$0xff]  ;;  %v188_v10 = vld [vmem:[%s1293_s3 + $0x18] sm:$0xff]  ;;  %909 = vmatprep.mubr.msk.f32.mxu1 %vm1116_vm1, %v1117_v11  ;;  %s1118_s7 = smov [#allocation5]   ;;  %vm800_vm3 = vcmask 64512  }
  0x16   :  { %990 = vmatprep.subr.bf16.mxu0 %v989_v3  ;;  %v1184_v9 = vpack.c.bf16 %v186_v6, %v185_v5  ;;  %v1193_v12 = vpack.c.bf16 %v188_v10, %v187_v7  ;;  %v1205_v13 = vld [vmem:[%s1292_s2] ss:$0 sm:$0xff]  ;;  %v40_v18 = vld [vmem:[#allocation2 + $0x10] sm:$0xff]  ;;  %v41_v19 = vld [vmem:[#allocation2 + $0x18] sm:$0xff] }
  0x17   :  { %992 = vmatpush3.bf16.msra.mxu0 %v989_v3  ;;  %v42_v27 = vld [vmem:[#allocation2 + $0x20] sm:$0xff]  ;;  %v43_v28 = vld [vmem:[#allocation2 + $0x28] sm:$0xff]  ;;  %v44_v29 = vld [vmem:[#allocation2 + $0x30] sm:$0xff] }
  0x18   :  { %1005 = vmatprep.subr.bf16.mxu0 %v1115_v8  ;;  %995 = vmatpush3.bf16.msra.mxu1 %v1184_v9  ;;  %v45_v30 = vld [vmem:[#allocation2 + $0x38] sm:$0xff]  ;;  %v716_v60 = vld [vmem:[%s1294_s4] sm:$0xff]  ;;  %v717_v61 = vld [vmem:[%s1294_s4 + $0x8] sm:$0xff] }
  0x19   :  { %996 = vmatprep.subr.bf16.mxu1 %v1115_v8  ;;  %v718_v62 = vld [vmem:[%s1294_s4 + $0x10] sm:$0xff]  ;;  %v1036_v63 = vpack.c.bf16 %v717_v61, %v716_v60  ;;  %v719_v0 = vld [vmem:[%s1294_s4 + $0x18] sm:$0xff]  ;;  %v833_v7 = vld [vmem:[%s1295_s5] ss:$0 sm:$0xff]  ;;  %s808_s4 = sshll.u32 %s1118_s7, 4  ;;  %s809_s4 = int_to_ptr.vmem [resolvable:$true] %s808_s4 }
  0x1a   :  { %890 = vmatmul.mubr.msk.f32.vlgmr.msra.gmra.mrb[0].mxu0 %vm55_vm0, %v39_v4  ;;  %v1039_v1 = vpack.c.bf16 %v719_v0, %v718_v62  ;;  %s1086_s8 = scalar_lea.vmem %s809_s4, 128  ;;  %p1091_p9 = scmp.lt.s32.totalorder %s809_s4, %s809_s4 }
  0x1b   :  { %1007 = vmatpush3.bf16.msra.mxu0 %v1184_v9  ;;  %892 = vmatprep.mubr.msk.f32.mxu0 %vm55_vm0, %v40_v18  ;;  %p1087_p8 = scmp.ne.s32.totalorder %s809_s4, %s1086_s8  ;;  %p1092_p10 = scmp.lt.s32.totalorder %s1086_s8, %s1086_s8 }
  0x1c   :  { %1008 = vmatprep.subr.bf16.mxu0 %v1115_v8  ;;  %998 = vmatpush3.bf16.msra.mxu1 %v1193_v12 }
  0x1d   :  { %999 = vmatprep.subr.bf16.mxu1 %v1115_v8  ;;  %p1093_p11 = por %p1092_p10, %p1091_p9 }
  0x1e   :  { %893 = vmatmul.mubr.msk.f32.gmra.mrb[2].mxu0 %vm55_vm0, %v41_v19 }
  0x1f   :  { %1010 = vmatpush3.bf16.msra.mxu0 %v1193_v12  ;;  %895 = vmatprep.mubr.msk.f32.mxu0 %vm55_vm0, %v42_v27  ;;  %p1094_p12 = pnand %p1093_p11, %p1087_p8 }
  0x20   :  { %1017 = vmatprep.subr.bf16.mxu0 %v1115_v8 }
  0x22   :  { %896 = vmatmul.mubr.msk.f32.gmra.mrb[4].mxu0 %vm55_vm0, %v43_v28 }
  0x23   :  { %898 = vmatprep.mubr.msk.f32.mxu0 %vm55_vm0, %v44_v29 }
  0x26   :  { %899 = vmatmul.mubr.msk.f32.gmra.mrb[6].mxu0 %vm55_vm0, %v45_v30 }
  0x27   :  { %931 = vmatprep.mubr.msk.f32.mxu0 %vm1116_vm1, %v1117_v11 }
  0xed   :  { %v891_v14 = vpop.f32.mrb[0].mxu0 }
  0xee   :  { %v146_v15 = vpop.f32.mrb[1].mxu0  ;;  %v152_v20 = vadd.f32 %v891_v14, %v1205_v13 }
  0xef   :  { %v147_v16 = vadd.f32 %v1205_v13, %v146_v15 }
  0xf1   :  { %1048 = vtanh.f32 %v147_v16  ;;  %v894_v25 = vpop.f32.mrb[2].mxu0 }
  0xf2   :  { %v156_v26 = vpop.f32.mrb[3].mxu0  ;;  %v162_v40 = vadd.f32 %v894_v25, %v1205_v13 }
  0xf3   :  { %v157_v31 = vadd.f32 %v1205_v13, %v156_v26 }
  0xf5   :  { %v897_v36 = vpop.f32.mrb[4].mxu0 }
  0xf6   :  { %v166_v37 = vpop.f32.mrb[5].mxu0  ;;  %v172_v50 = vadd.f32 %v897_v36, %v1205_v13 }
  0xf7   :  { %v167_v45 = vadd.f32 %v1205_v13, %v166_v37 }
  0xf9   :  { %v900_v38 = vpop.f32.mrb[6].mxu0 }
  0xfa   :  { %v176_v39 = vpop.f32.mrb[7].mxu0  ;;  %v182_v2 = vadd.f32 %v900_v38, %v1205_v13 }
  0xfb   :  { %v1049_v17 = vpop.eup %1048  ;;  %v177_v55 = vadd.f32 %v1205_v13, %v176_v39 }
  0xfc   :  { %910 = vmatmul.mubr.msk.f32.vlgmr.msra.gmra.mrb[0].mxu1 %vm190_vm2, %v1049_v17 }
  0xfd   :  { %1001 = vmatpush3.bf16.msra.mxu1 %v1184_v9  ;;  %920 = vmatprep.mubr.msk.f32.mxu1 %vm1116_vm1, %v1117_v11 }
  0xfe   :  { %1002 = vmatprep.subr.bf16.mxu1 %v1115_v8 }
 0x101   :  { %1004 = vmatpush3.bf16.msra.mxu1 %v1193_v12 }
 0x102   :  { %1011 = vmatprep.subr.bf16.mxu1 %v1115_v8 }
 0x1cf   :  { %v260_v21 = vpop.f32.mrb[0].mxu1 }
 0x1d0   :  { %v264_v22 = vadd.f32 %v260_v21, %v152_v20  ;;  %v911_v23 = vpop.f32.mrb[1].mxu1 }
 0x1d2   :  { %1050 = vtanh.f32 %v264_v22 }
 0x1dc   :  { %v1051_v24 = vpop.eup %1050 }
 0x1dd   :  { %921 = vmatmul.mubr.msk.f32.vlgmr.msra.gmra.mrb[2].mxu1 %vm190_vm2, %v1051_v24 }
 0x1de   :  { %1013 = vmatpush3.bf16.msra.mxu1 %v1184_v9  ;;  %942 = vmatprep.mubr.msk.f32.mxu1 %vm1116_vm1, %v1117_v11 }
 0x1df   :  { %1014 = vmatprep.subr.bf16.mxu1 %v1115_v8 }
 0x1e2   :  { %1016 = vmatpush3.bf16.msra.mxu1 %v1193_v12 }
 0x1e3   :  { %1023 = vmatprep.subr.bf16.mxu1 %v1115_v8 }
 0x2b0   :  { %v335_v32 = vpop.f32.mrb[2].mxu1 }
 0x2b1   :  { %v339_v33 = vadd.f32 %v335_v32, %v157_v31  ;;  %v922_v34 = vpop.f32.mrb[3].mxu1 }
 0x2b3   :  { %1052 = vtanh.f32 %v339_v33 }
 0x2bd   :  { %v1053_v35 = vpop.eup %1052 }
 0x2be   :  { %932 = vmatmul.mubr.msk.f32.vlgmr.msra.gmra.mrb[8].mxu0 %vm190_vm2, %v1053_v35 }
 0x2bf   :  { %1019 = vmatpush3.bf16.msra.mxu0 %v1184_v9  ;;  %953 = vmatprep.mubr.msk.f32.mxu0 %vm1116_vm1, %v1117_v11 }
 0x2c0   :  { %1020 = vmatprep.subr.bf16.mxu0 %v1115_v8 }
 0x2c3   :  { %1022 = vmatpush3.bf16.msra.mxu0 %v1193_v12 }
 0x2c4   :  { %1029 = vmatprep.subr.bf16.mxu0 %v1115_v8 }
 0x391   :  { %v410_v41 = vpop.f32.mrb[8].mxu0 }
 0x392   :  { %v414_v42 = vadd.f32 %v410_v41, %v162_v40  ;;  %v933_v43 = vpop.f32.mrb[9].mxu0 }
 0x394   :  { %1054 = vtanh.f32 %v414_v42 }
 0x39e   :  { %v1055_v44 = vpop.eup %1054 }
 0x39f   :  { %943 = vmatmul.mubr.msk.f32.vlgmr.msra.gmra.mrb[4].mxu1 %vm190_vm2, %v1055_v44 }
 0x3a0   :  { %1025 = vmatpush3.bf16.msra.mxu1 %v1184_v9  ;;  %964 = vmatprep.mubr.msk.f32.mxu1 %vm1116_vm1, %v1117_v11 }
 0x3a1   :  { %1026 = vmatprep.subr.bf16.mxu1 %v1115_v8 }
 0x3a4   :  { %1028 = vmatpush3.bf16.msra.mxu1 %v1193_v12 }
 0x3a5   :  { %1035 = vmatprep.subr.bf16.mxu1 %v1115_v8 }
 0x472   :  { %v485_v46 = vpop.f32.mrb[4].mxu1 }
 0x473   :  { %v489_v47 = vadd.f32 %v485_v46, %v167_v45  ;;  %v944_v48 = vpop.f32.mrb[5].mxu1 }
 0x475   :  { %1056 = vtanh.f32 %v489_v47 }
 0x47f   :  { %v1057_v49 = vpop.eup %1056 }
 0x480   :  { %954 = vmatmul.mubr.msk.f32.vlgmr.msra.gmra.mrb[10].mxu0 %vm190_vm2, %v1057_v49 }
 0x481   :  { %1031 = vmatpush3.bf16.msra.mxu0 %v1184_v9  ;;  %975 = vmatprep.mubr.msk.f32.mxu0 %vm1116_vm1, %v1117_v11 }
 0x482   :  { %1032 = vmatprep.subr.bf16.mxu0 %v1115_v8 }
 0x485   :  { %1034 = vmatpush3.bf16.msra.mxu0 %v1193_v12 }
 0x553   :  { %v560_v51 = vpop.f32.mrb[10].mxu0 }
 0x554   :  { %v564_v52 = vadd.f32 %v560_v51, %v172_v50  ;;  %v955_v53 = vpop.f32.mrb[11].mxu0 }
 0x556   :  { %1058 = vtanh.f32 %v564_v52 }
 0x560   :  { %v1059_v54 = vpop.eup %1058 }
 0x561   :  { %965 = vmatmul.mubr.msk.f32.vlgmr.msra.gmra.mrb[6].mxu1 %vm190_vm2, %v1059_v54 }
 0x562   :  { %986 = vmatprep.mubr.msk.f32.mxu1 %vm1116_vm1, %v1117_v11  ;;  %1037 = vmatpush3.bf16.msra.mxu1 %v1036_v63 }
 0x563   :  { %1038 = vmatprep.subr.bf16.mxu1 %v1115_v8 }
 0x566   :  { %1040 = vmatpush3.bf16.msra.mxu1 %v1039_v1 }
 0x634   :  { %v635_v56 = vpop.f32.mrb[6].mxu1 }
 0x635   :  { %v639_v57 = vadd.f32 %v635_v56, %v177_v55  ;;  %v966_v58 = vpop.f32.mrb[7].mxu1 }
 0x637   :  { %1060 = vtanh.f32 %v639_v57 }
 0x641   :  { %v1061_v59 = vpop.eup %1060 }
 0x642   :  { %976 = vmatmul.mubr.msk.f32.vlgmr.msra.gmra.mrb[12].mxu0 %vm190_vm2, %v1061_v59 }
 0x715   :  { %v710_v3 = vpop.f32.mrb[12].mxu0 }
 0x716   :  { %v714_v4 = vadd.f32 %v710_v3, %v182_v2  ;;  %v977_v5 = vpop.f32.mrb[13].mxu0 }
 0x718   :  { %1062 = vtanh.f32 %v714_v4 }
 0x722   :  { %v1063_v6 = vpop.eup %1062 }
 0x723   :  { %987 = vmatmul.mubr.msk.f32.vlgmr.msra.gmra.mrb[8].mxu1 %vm190_vm2, %v1063_v6 }
 0x7f6   :  { %v796_v9 = vpop.f32.mrb[8].mxu1 }
 0x7f7   :  { %v797_v10 = vadd.f32 %v833_v7, %v796_v9  ;;  %v988_v8 = vpop.f32.mrb[9].mxu1 }
 0x7f9   :  { %801 = vst.msk [vmem:[#allocation5] sm:$0xff] %vm800_vm3, %v797_v10 }
 0x7fa   :  { %1097 = shalt.err (!%p1094_p12)
}
 0x7fb   :  { %s1098_s11 = scalar_lea.hbm %s1296_s6, 128 }
 0x7fc   :  { %p1099_p13 = scmp.ne.s32.totalorder %s1296_s6, %s1098_s11  ;;  %p1102_p0 = scmp.lt.u32.totalorder %s1098_s11, %s1296_s6 }
 0x7fe   :  { %p1104_p1 = pnand %p1102_p0, %p1099_p13 }
 0x800   :  { %1107 = shalt.err (!%p1104_p1)
}
 0x801   :  { %811 = dma.vmem_to_hbm [thread:$0]  %s809_s4, 128, %s1296_s6, [#allocation4]  }
 0x802   :  { %1110 = dma.done.wait [#allocation4], 128  }
 0x803   :  { %1111 = vsyncadd [#allocation4], 4294967168 }
 0x804   :  { %815 = vsyncpa [#allocation3], 1 }
 0x805   :  { %816 = vsyncpa [#allocation4], 1 }

</bundles_post_ra>
